<compile_context>
chip_gen: v5e
topology: v5e:2x2
jax: 0.10.0
libtpu: 0.0.40
codegen_flags: <defaults>
</compile_context>

<pallas_src>
import functools

import jax
import jax.numpy as jnp
import numpy as np
from jax import lax
from jax.experimental import pallas as pl
from jax.experimental.pallas import tpu as pltpu


def _round_up(x, m):
    return (x + m - 1) // m * m


@functools.lru_cache(maxsize=None)
def _vmem_capacity_bytes():
    """Per-core VMEM capacity, with conservative fallbacks."""
    try:
        info = pltpu.get_tpu_info()
        for attr in ("vmem_capacity_bytes", "vmem_size_bytes", "vmem_bytes"):
            cap = getattr(info, attr, None)
            if cap:
                return int(min(int(cap), 128 * 1024 * 1024))
    except Exception:
        pass
    try:
        kind = jax.devices()[0].device_kind.lower()
        if "v2" in kind or "v3" in kind:
            return 16 * 1024 * 1024
        if any(t in kind for t in ("v4", "v5", "v6")):
            return 128 * 1024 * 1024
    except Exception:
        pass
    return 64 * 1024 * 1024  # v7x per-TC floor


def _vmem_limit_bytes():
    # ~75% of physical: 96 MiB on v5e/v6e (128 MiB phys), 48 MiB on v7x (64 MiB).
    cap = _vmem_capacity_bytes()
    return int(min(cap * 3 // 4, 100 * 1024 * 1024))


# ----------------------------- kernels --------------------------------------


def _edge_prod_kernel(a_ref, b_ref, o_ref):
    # (TB, E) * (TB, E) elementwise -- pure VPU work on full, unmasked tiles.
    o_ref[...] = a_ref[...] * b_ref[...]


def _fc_softmax_kernel(x_ref, w_ref, b_ref, o_ref, m_sc):
    """V-tiled linear + softmax with a VMEM-resident (TB, Vp) output block.

    x_ref: (TB, E)   gathered embeddings (same block across the V axis)
    w_ref: (TV, E)   weight tile in native (V, E) layout (no HBM transpose)
    b_ref: (1, TV)   bias tile (f32)
    o_ref: (TB, Vp)  output block, resident in VMEM across the V sweep
    m_sc:  (TB, 1)   running row max

    The j loop does only MXU + an XLU max-reduce (no exp), so the weight
    stream / MXU stays the binding resource.  A single exp pass plus one
    reciprocal per row happen once in the finalize.
    """
    j = pl.program_id(1)
    tv = w_ref.shape[0]

    @pl.when(j == 0)
    def _():
        m_sc[...] = jnp.full_like(m_sc, -jnp.inf)

    # (TB, E) @ (TV, E)^T -> (TB, TV) on the MXU with f32 accumulation.
    logits = lax.dot_general(
        x_ref[...], w_ref[...],
        (((1,), (1,)), ((), ())),
        preferred_element_type=jnp.float32,
    ) + b_ref[...]

    # Stash raw logits into the resident output block (lane-dense, tv % 128 == 0
    # is asserted in the wrapper so this alignment hint is valid).
    col = pl.multiple_of(j * tv, 128)
    o_ref[:, pl.ds(col, tv)] = logits.astype(o_ref.dtype)

    # Running max only (cheap XLU reduce); no exp in the hot loop.
    m_sc[...] = jnp.maximum(m_sc[...], jnp.max(logits, axis=-1, keepdims=True))

    @pl.when(j == pl.num_programs(1) - 1)
    def _():
        # Single exp pass over the resident logits + per-row reciprocal.
        p = jnp.exp(o_ref[...].astype(jnp.float32) - m_sc[...])
        inv = 1.0 / jnp.sum(p, axis=-1, keepdims=True)   # (TB, 1) divides: cheap
        o_ref[...] = (p * inv).astype(o_ref.dtype)


# ----------------------------- tile sizing ------------------------------------


def _pick_tiles_softmax(n, v, e, x_bytes, w_bytes, out_bytes, budget):
    # Vocab tile: large enough to amortize per-grid-step overhead, lane aligned.
    tv = min(2048, _round_up(v, 128))
    v_pad = _round_up(v, tv)
    # Fixed cost: 2x (tv, e) weight buffers (default depth-2 pipelining;
    # bump to pl.Buffered(3) only if profiling shows exposed weight DMA)
    # + 2x (1, tv) bias buffers.
    fixed = 2 * tv * e * w_bytes + 2 * tv * 4
    n8 = _round_up(n, 8)
    tb = 8
    for cand in (1024, 512, 256, 128, 64, 32, 16, 8):
        c = min(cand, n8)
        need = (fixed
                + 2 * c * e * x_bytes          # activation double buffer
                + 2 * c * v_pad * out_bytes    # resident output (+ writeback buf)
                + c * 4)                       # running-max scratch
        if need <= budget:
            tb = c
            break
    return tb, tv, v_pad


def _pick_tb_elementwise(n, e, dtype_bytes, budget):
    n8 = _round_up(n, 8)
    for cand in (1024, 512, 256, 128, 64, 32, 16, 8):
        c = min(cand, n8)
        # 3 arrays (x_in, x_out, out) x 2 pipeline buffers x (tb, e).
        if 6 * c * e * dtype_bytes <= budget:
            return c
    return 8


# ----------------------------- wrappers --------------------------------------


@jax.jit
def neg_samp_forward(g, emb_in, emb_out):
    """pgy_sym = Emb_in[g[:, 0]] * Emb_out[g[:, 1]]  -> (N, E)."""
    n = g.shape[0]
    e = emb_in.shape[1]

    vmem_limit = _vmem_limit_bytes()
    tb = _pick_tb_elementwise(n, e, jnp.dtype(emb_in.dtype).itemsize,
                              int(vmem_limit * 0.85))

    # Gather hoisted to XLA (dense, lane-aligned (N, E) tiles feed the kernel).
    # At E=128 the per-row payload (512 B) is below the ~2 KiB threshold where
    # an in-kernel per-row DMA gather pays off; see TODO(synk) in the header.
    x_in = jnp.take(emb_in, g[:, 0].astype(jnp.int32), axis=0)
    x_out = jnp.take(emb_out, g[:, 1].astype(jnp.int32), axis=0)

    n_pad = _round_up(n, tb)
    if n_pad != n:
        x_in = jnp.pad(x_in, ((0, n_pad - n), (0, 0)))
        x_out = jnp.pad(x_out, ((0, n_pad - n), (0, 0)))

    out = pl.pallas_call(
        _edge_prod_kernel,
        out_shape=jax.ShapeDtypeStruct((n_pad, e), emb_in.dtype),
        grid_spec=pl.GridSpec(
            grid=(n_pad // tb,),
            in_specs=[
                pl.BlockSpec((tb, e), lambda i: (i, 0)),
                pl.BlockSpec((tb, e), lambda i: (i, 0)),
            ],
            out_specs=pl.BlockSpec((tb, e), lambda i: (i, 0)),
        ),
        compiler_params=pltpu.CompilerParams(
            dimension_semantics=("parallel",),   # shards across 2 TCs on v7x
            vmem_limit_bytes=vmem_limit,
        ),
    )(x_in, x_out)
    return out[:n]


@functools.partial(jax.jit, static_argnames=("compute_dtype", "out_dtype"))
def softmax_forward(g, emb_in, fc1_w, fc1_b, *,
                    compute_dtype=jnp.bfloat16, out_dtype=jnp.float32):
    """pgy_sym = softmax(Emb_in[g[:, 0]] @ fc1_w.T + fc1_b, dim=1) -> (N, V)."""
    n = g.shape[0]
    v, e = fc1_w.shape  # PyTorch Linear weight layout: (num_ver, embedding_size)

    x_bytes = jnp.dtype(compute_dtype).itemsize
    out_bytes = jnp.dtype(out_dtype).itemsize
    vmem_limit = _vmem_limit_bytes()
    tb, tv, v_pad = _pick_tiles_softmax(
        n, v, e, x_bytes, x_bytes, out_bytes, int(vmem_limit * 0.85))
    assert tv % 128 == 0, "vocab tile must be lane aligned"

    x = jnp.take(emb_in, g[:, 0].astype(jnp.int32), axis=0).astype(compute_dtype)
    w = fc1_w.astype(compute_dtype)          # native (V, E) layout, no transpose
    b = fc1_b.astype(jnp.float32)            # bias / exp / max math stays f32

    n_pad = _round_up(n, tb)
    if n_pad != n:
        x = jnp.pad(x, ((0, n_pad - n), (0, 0)))
    if v_pad != v:
        # Padded vocab rows: zero weights + very negative bias -> exp() == 0,
        # so they never contribute to the softmax denominator.
        w = jnp.pad(w, ((0, v_pad - v), (0, 0)))
        b = jnp.pad(b, (0, v_pad - v), constant_values=-1e30)
    b2d = b.reshape(1, v_pad)

    grid = (n_pad // tb, v_pad // tv)

    out = pl.pallas_call(
        _fc_softmax_kernel,
        out_shape=jax.ShapeDtypeStruct((n_pad, v_pad), out_dtype),
        grid_spec=pltpu.PrefetchScalarGridSpec(
            num_scalar_prefetch=0,
            grid=grid,
            in_specs=[
                pl.BlockSpec((tb, e), lambda i, j: (i, 0)),    # activations
                pl.BlockSpec((tv, e), lambda i, j: (j, 0)),    # weight V-tile
                pl.BlockSpec((1, tv), lambda i, j: (0, j)),    # bias V-tile
            ],
            out_specs=pl.BlockSpec((tb, v_pad), lambda i, j: (i, 0)),
            scratch_shapes=[
                pltpu.VMEM((tb, 1), jnp.float32),   # running max
            ],
        ),
        compiler_params=pltpu.CompilerParams(
            dimension_semantics=("parallel", "arbitrary"),
            vmem_limit_bytes=vmem_limit,
        ),
    )(x, w, b2d)
    return out[:n, :v]


# ----------------------------- module ----------------------------------------


class NeuralNetUnsupervisedPallas:
    def __init__(self, num_ver, embedding_size, neg_samp, key):
        self.num_ver = num_ver
        self.embedding_size = embedding_size
        self.neg_samp = neg_samp
        k1, k2, k3, k4 = jax.random.split(key, 4)
        # Deterministic synthetic parameter init (same shapes as nn.Module __init__).
        self.emb_in = jax.random.normal(k1, (num_ver, embedding_size), jnp.float32)
        self.fc1_w = jax.random.normal(k2, (num_ver, embedding_size), jnp.float32) * 0.05
        self.fc1_b = jax.random.normal(k3, (num_ver,), jnp.float32) * 0.05
        if neg_samp > 0:
            self.emb_out = jax.random.normal(k4, (num_ver, embedding_size), jnp.float32)
        else:
            self.emb_out = None

    def forward(self, g):
        if self.neg_samp > 0:
            return neg_samp_forward(g, self.emb_in, self.emb_out)
        else:
            # Default: bf16 weight/activation stream, f32 accumulation + softmax.
            return softmax_forward(g, self.emb_in, self.fc1_w, self.fc1_b)

    def get_embedding(self):
        return self.emb_in


# ----------------------------- main -------------------------------------------

if __name__ == "__main__":
    key = jax.random.PRNGKey(0)
    num_ver = 64
    embedding_size = 128
    n_edges = 8

    k_model, k_g = jax.random.split(key)
    g = jax.random.randint(k_g, (n_edges, 2), 0, num_ver, dtype=jnp.int32)

    # Branch 1: neg_samp > 0 (elementwise product of gathered embeddings)
    model_neg = NeuralNetUnsupervisedPallas(num_ver, embedding_size, neg_samp=5, key=k_model)
    out_neg = jax.block_until_ready(model_neg.forward(g))
    ref_neg = model_neg.emb_in[g[:, 0]] * model_neg.emb_out[g[:, 1]]
    np.testing.assert_allclose(np.asarray(out_neg), np.asarray(ref_neg),
                               rtol=1e-6, atol=1e-6)

    # Branch 2: neg_samp == 0 (linear + softmax over dim=1)
    model_sm = NeuralNetUnsupervisedPallas(num_ver, embedding_size, neg_samp=0, key=k_model)
    x = model_sm.emb_in[g[:, 0]]
    ref_sm = jax.nn.softmax(x @ model_sm.fc1_w.T + model_sm.fc1_b, axis=1)

    # f32 compute path: tight tolerances.
    out_f32 = jax.block_until_ready(
        softmax_forward(g, model_sm.emb_in, model_sm.fc1_w, model_sm.fc1_b,
                        compute_dtype=jnp.float32))
    np.testing.assert_allclose(np.asarray(out_f32), np.asarray(ref_sm),
                               rtol=1e-5, atol=1e-6)

    # Default path (bf16 weight/activation stream, f32 accumulation): loose tolerances.
    out_bf16 = jax.block_until_ready(model_sm.forward(g))
    np.testing.assert_allclose(np.asarray(out_bf16), np.asarray(ref_sm),
                               rtol=1e-1, atol=5e-3)

    print("KERNEL_OK")
</pallas_src>

<mosaic_0001>
module attributes {stable_mosaic.version = 11 : i64} {
  func.func @_edge_prod_kernel(%arg0: i32, %arg1: memref<8x128xf32, #tpu.memory_space<vmem>>, %arg2: memref<8x128xf32, #tpu.memory_space<vmem>>, %arg3: memref<8x128xf32, #tpu.memory_space<vmem>>) attributes {dimension_semantics = [#tpu.dimension_semantics<parallel>], iteration_bounds = array<i64: 1>, scalar_prefetch = 0 : i64, scratch_operands = 0 : i64, tpu.core_type = #tpu.core_type<tc>, window_params = [{transform_indices = @transform_0, window_bounds = array<i64: 8, 128>}, {transform_indices = @transform_1, window_bounds = array<i64: 8, 128>}, {transform_indices = @transform_2, window_bounds = array<i64: 8, 128>}]} {
    %c0 = arith.constant 0 : index
    %c0_0 = arith.constant 0 : index
    %0 = vector.load %arg1[%c0, %c0_0] : memref<8x128xf32, #tpu.memory_space<vmem>>, vector<8x128xf32>
    %c0_1 = arith.constant 0 : index
    %c0_2 = arith.constant 0 : index
    %1 = vector.load %arg2[%c0_1, %c0_2] : memref<8x128xf32, #tpu.memory_space<vmem>>, vector<8x128xf32>
    %2 = arith.mulf %0, %1 : vector<8x128xf32>
    %c0_3 = arith.constant 0 : index
    %c0_4 = arith.constant 0 : index
    %3 = vector.load %arg3[%c0_3, %c0_4] : memref<8x128xf32, #tpu.memory_space<vmem>>, vector<8x128xf32>
    tpu.vector_store %arg3[%c0_3, %c0_4], %2 {strides = array<i32>} : memref<8x128xf32, #tpu.memory_space<vmem>>, vector<8x128xf32>,
    return
  }
  func.func @transform_0(%arg0: i32) -> (i32, i32) {
    %c0_i32 = arith.constant 0 : i32
    %c0_i32_0 = arith.constant 0 : i32
    return %arg0, %c0_i32 : i32, i32
  }
  func.func @transform_1(%arg0: i32) -> (i32, i32) {
    %c0_i32 = arith.constant 0 : i32
    %c0_i32_0 = arith.constant 0 : i32
    return %arg0, %c0_i32 : i32, i32
  }
  func.func @transform_2(%arg0: i32) -> (i32, i32) {
    %c0_i32 = arith.constant 0 : i32
    %c0_i32_0 = arith.constant 0 : i32
    return %arg0, %c0_i32 : i32, i32
  }
}

</mosaic_0001>

<bundles_post_ra>
// kernel: neg_samp_forward.1
= control target key start
LH: loop header
LB: loop body
LE: loop exit
PB: predicated region body
PF: predicated region fallthrough
CT: control target
= control target key end

     0   :  { %s84_s0 = inlined_call_operand.vmem [shape: f32[8,128], index: 0, kind: input, shape index: {}]   ;;  %s85_s1 = inlined_call_operand.vmem [shape: f32[8,128], index: 1, kind: input, shape index: {}]   ;;  %s86_s2 = inlined_call_operand.hbm [shape: f32[8,128], index: 2, kind: output, shape index: {}]  }
   0x1   :  { %v12_v0 = vld [vmem:[%s84_s0] sm:$0xff] }
   0x2   :  { %v13_v1 = vld [vmem:[%s85_s1] sm:$0xff] }
   0x3   :  { %7 = vsyncpa [#allocation3], 0  ;;  %s23_s15 = sshll.u32 %s86_s2, 4  ;;  %v14_v2 = vmul.f32 %v13_v1, %v12_v0  ;;  %s59_s16 = smov [#allocation2]   ;;  %s24_s15 = int_to_ptr.hbm [resolvable:$true] %s23_s15 }
   0x4   :  { %s21_s17 = sshll.u32 %s59_s16, 4  ;;  %s22_s17 = int_to_ptr.vmem [resolvable:$true] %s21_s17 }
   0x5   :  { %15 = vst [vmem:[#allocation2] sm:$0xff] %v14_v2 }
   0x6   :  { %26 = dma.vmem_to_hbm [thread:$0]  %s22_s17, 128, %s24_s15, [#allocation3]  }
   0x7   :  { %57 = dma.done.wait [#allocation3], 128  }
   0x8   :  { %58 = vsyncadd [#allocation3], 4294967168 }
   0x9   :  { %31 = vsyncpa [#allocation3], 1 }

</bundles_post_ra>
